<compile_context>
chip_gen: v7x
topology: tpu7x:2x2x1
jax: 0.10.0
libtpu: 0.0.40
codegen_flags: <defaults>
</compile_context>

<pallas_src>
import jax
import jax.numpy as jnp
from jax.experimental import pallas as pl
from jax.experimental.pallas import tpu as pltpu

input_size = 10
hidden_size = 40
output_size = 1  # the VPU-reduce second layer below assumes output_size == 1


def mlp_kernel(x_ref, w1_ref, b1_ref, w2t_ref, b2_ref, o_ref):
    # hidden = relu(x @ w1 + b1)            -- single MXU matmul, f32 accumulate
    h = jnp.dot(x_ref[...], w1_ref[...], preferred_element_type=jnp.float32)
    h = jnp.maximum(h + b1_ref[...], 0.0)            # bias bcast + ReLU on VPU
    # out = hidden @ w2 + b2 with w2 passed transposed as [1, H]:
    # VPU elementwise multiply + lane reduction instead of an N=1 matmul.
    o = jnp.sum(h * w2t_ref[...], axis=-1, keepdims=True)     # (rows, 1)
    o = o + b2_ref[0, 0]                                       # SMEM scalar bias
    # Lane-dense store: relayout (rows, 1) -> (1, rows) so the output block is
    # written with unmasked full-lane stores instead of masked vst.msk.
    o_ref[...] = o.astype(o_ref.dtype).T


def _cost_estimate(rows):
    weight_bytes = (input_size * hidden_size + hidden_size
                    + hidden_size * output_size + output_size) * 4
    return pl.CostEstimate(
        flops=2 * rows * input_size * hidden_size + 2 * rows * hidden_size,
        transcendentals=0,
        bytes_accessed=rows * (input_size + output_size) * 4 + weight_bytes,
    )


def neural_network_forward(x, w1, b1, w2, b2, *, gridless_max_rows=8192,
                           tile_b=4096):
    assert w2.shape == (hidden_size, output_size) and output_size == 1
    assert x.ndim == 2 and x.shape[1] == input_size
    batch = x.shape[0]
    w2t = w2.T  # [1, hidden_size] -> lane-dense operand for the VPU reduce

    if batch <= gridless_max_rows:
        # Overhead-bound small/medium batch: no grid, no pipeline
        # prologue/epilogue, no double-buffering. Everything lives in VMEM
        # (~1.5 KiB padded/row -> 8192 rows fits v5e's 16 MiB default scoped
        # VMEM); b2 is an SMEM scalar. Output is emitted lane-dense (1, batch).
        out = pl.pallas_call(
            mlp_kernel,
            out_shape=jax.ShapeDtypeStruct((1, batch), jnp.float32),
            in_specs=[
                pl.BlockSpec(memory_space=pltpu.MemorySpace.VMEM),  # x
                pl.BlockSpec(memory_space=pltpu.MemorySpace.VMEM),  # w1
                pl.BlockSpec(memory_space=pltpu.MemorySpace.VMEM),  # b1
                pl.BlockSpec(memory_space=pltpu.MemorySpace.VMEM),  # w2t
                pl.BlockSpec(memory_space=pltpu.MemorySpace.SMEM),  # b2 scalar
            ],
            out_specs=pl.BlockSpec(memory_space=pltpu.MemorySpace.VMEM),
            cost_estimate=_cost_estimate(batch),
        )(x, w1, b1, w2t, b2)
        return out.reshape(batch, output_size)

    # Batch-tiled path: x is pipelined (double-buffered) over the batch axis,
    # weights/biases stay VMEM-resident (constant block index). The output is
    # a lane-dense (1, padded_batch) slab written in (1, tile_b) blocks.
    assert tile_b % 128 == 0, "tile_b must be a multiple of 128 (lane-dense out)"
    num_tiles = pl.cdiv(batch, tile_b)
    padded_batch = num_tiles * tile_b
    if padded_batch != batch:
        # Lane-dense output layout needs whole tiles; pad and slice off below.
        x = jnp.pad(x, ((0, padded_batch - batch), (0, 0)))

    out = pl.pallas_call(
        mlp_kernel,
        out_shape=jax.ShapeDtypeStruct((1, padded_batch), jnp.float32),
        grid_spec=pltpu.PrefetchScalarGridSpec(
            num_scalar_prefetch=0,
            grid=(num_tiles,),
            in_specs=[
                pl.BlockSpec((tile_b, input_size), lambda i: (i, 0)),  # x tile
                pl.BlockSpec(w1.shape, lambda i: (0, 0)),              # resident
                pl.BlockSpec(b1.shape, lambda i: (0, 0)),              # resident
                pl.BlockSpec(w2t.shape, lambda i: (0, 0)),             # resident
                pl.BlockSpec(memory_space=pltpu.MemorySpace.SMEM),     # b2 scalar
            ],
            out_specs=pl.BlockSpec((1, tile_b), lambda i: (0, i)),     # lane-dense
        ),
        compiler_params=pltpu.CompilerParams(
            # Batch tiles are independent. With the 8192-row gridless cutoff,
            # any batch reaching this path has >= 3 grid steps, so this shards
            # across both v7x TensorCores.
            dimension_semantics=("parallel",),
            vmem_limit_bytes=32 * 1024 * 1024,
        ),
        cost_estimate=_cost_estimate(padded_batch),
    )(x, w1, b1, w2t, b2)
    return out.reshape(padded_batch, output_size)[:batch]


def init_params(key):
    # Deterministic init mimicking nn.Linear default: U(-1/sqrt(fan_in), +...)
    k1, k2, k3, k4 = jax.random.split(key, 4)
    bound1 = 1.0 / jnp.sqrt(float(input_size))
    bound2 = 1.0 / jnp.sqrt(float(hidden_size))
    w1 = jax.random.uniform(k1, (input_size, hidden_size), jnp.float32,
                            minval=-bound1, maxval=bound1)
    b1 = jax.random.uniform(k2, (1, hidden_size), jnp.float32,
                            minval=-bound1, maxval=bound1)
    w2 = jax.random.uniform(k3, (hidden_size, output_size), jnp.float32,
                            minval=-bound2, maxval=bound2)
    b2 = jax.random.uniform(k4, (1, output_size), jnp.float32,
                            minval=-bound2, maxval=bound2)
    return w1, b1, w2, b2


def reference_forward(x, w1, b1, w2, b2):
    return jnp.maximum(x @ w1 + b1, 0.0) @ w2 + b2


if __name__ == "__main__":
    key = jax.random.PRNGKey(0)
    kx, kp, kx2 = jax.random.split(key, 3)
    w1, b1, w2, b2 = init_params(kp)

    # Small batch -> gridless, overhead-minimal path (lane-dense output).
    batch = 8
    x = jax.random.normal(kx, (batch, input_size), jnp.float32)
    out = jax.block_until_ready(neural_network_forward(x, w1, b1, w2, b2))
    ref = reference_forward(x, w1, b1, w2, b2)
    assert out.shape == (batch, output_size)
    assert jnp.allclose(out, ref, atol=1e-5, rtol=1e-5)

    # Exercise the tiled lane-dense path (force it with small cutoff/tile) with
    # a non-divisible batch to cover the pad-and-slice logic.
    batch2 = 1000
    x2 = jax.random.normal(kx2, (batch2, input_size), jnp.float32)
    out2 = jax.block_until_ready(
        neural_network_forward(x2, w1, b1, w2, b2,
                               gridless_max_rows=256, tile_b=256))
    ref2 = reference_forward(x2, w1, b1, w2, b2)
    assert out2.shape == (batch2, output_size)
    assert jnp.allclose(out2, ref2, atol=1e-5, rtol=1e-5)

    print("KERNEL_OK")
</pallas_src>

<mosaic_0001>
module attributes {stable_mosaic.version = 11 : i64} {
  func.func @mlp_kernel(%arg0: memref<8x10xf32, #tpu.memory_space<vmem>>, %arg1: memref<10x40xf32, #tpu.memory_space<vmem>>, %arg2: memref<1x40xf32, #tpu.memory_space<vmem>>, %arg3: memref<1x40xf32, #tpu.memory_space<vmem>>, %arg4: memref<1x1xf32, #tpu.memory_space<smem>>, %arg5: memref<1x8xf32, #tpu.memory_space<vmem>>) attributes {dimension_semantics = [], scalar_prefetch = 0 : i64, scratch_operands = 0 : i64, tpu.core_type = #tpu.core_type<tc>} {
    %c0 = arith.constant 0 : index
    %c0_0 = arith.constant 0 : index
    %0 = vector.load %arg0[%c0, %c0_0] : memref<8x10xf32, #tpu.memory_space<vmem>>, vector<8x10xf32>
    %c0_1 = arith.constant 0 : index
    %c0_2 = arith.constant 0 : index
    %1 = vector.load %arg1[%c0_1, %c0_2] : memref<10x40xf32, #tpu.memory_space<vmem>>, vector<10x40xf32>
    %cst = arith.constant dense<0.000000e+00> : vector<8x40xf32>
    %2 = tpu.matmul %0, %1, %cst {dimension_numbers = #tpu.dot_dimension_numbers<[1], [0], [0], [1], [0, 0, 1, 1], [], []>} : vector<8x10xf32>, vector<10x40xf32>, vector<8x40xf32> -> vector<8x40xf32>
    %c0_3 = arith.constant 0 : index
    %c0_4 = arith.constant 0 : index
    %3 = vector.load %arg2[%c0_3, %c0_4] : memref<1x40xf32, #tpu.memory_space<vmem>>, vector<1x40xf32>
    %4 = vector.broadcast %3 : vector<1x40xf32> to vector<8x40xf32>
    %5 = arith.addf %2, %4 : vector<8x40xf32>
    %cst_5 = arith.constant 0.000000e+00 : f32
    %6 = vector.broadcast %cst_5 : f32 to vector<8x40xf32>
    %7 = arith.maximumf %5, %6 : vector<8x40xf32>
    %c0_6 = arith.constant 0 : index
    %c0_7 = arith.constant 0 : index
    %8 = vector.load %arg3[%c0_6, %c0_7] : memref<1x40xf32, #tpu.memory_space<vmem>>, vector<1x40xf32>
    %9 = vector.broadcast %8 : vector<1x40xf32> to vector<8x40xf32>
    %10 = arith.mulf %7, %9 : vector<8x40xf32>
    %cst_8 = arith.constant dense<0.000000e+00> : vector<8xf32>
    %11 = vector.multi_reduction <add>, %10, %cst_8 [1] : vector<8x40xf32> to vector<8xf32>
    %12 = vector.shape_cast %11 : vector<8xf32> to vector<8x1xf32>
    %c0_9 = arith.constant 0 : index
    %c0_10 = arith.constant 0 : index
    %13 = memref.load %arg4[%c0_9, %c0_10] : memref<1x1xf32, #tpu.memory_space<smem>>
    %14 = vector.broadcast %13 : f32 to vector<8x1xf32>
    %15 = arith.addf %12, %14 : vector<8x1xf32>
    %16 = tpu.transpose %15, [1, 0] : vector<8x1xf32> -> vector<1x8xf32>
    %c0_11 = arith.constant 0 : index
    %c0_12 = arith.constant 0 : index
    %17 = vector.load %arg5[%c0_11, %c0_12] : memref<1x8xf32, #tpu.memory_space<vmem>>, vector<1x8xf32>
    tpu.vector_store %arg5[%c0_11, %c0_12], %16 {strides = array<i32>} : memref<1x8xf32, #tpu.memory_space<vmem>>, vector<1x8xf32>,
    return
  }
}

</mosaic_0001>

<bundles_post_ra>
// kernel: tpu_custom_call.1
= control target key start
LH: loop header
LB: loop body
LE: loop exit
PB: predicated region body
PF: predicated region fallthrough
CT: control target
= control target key end

     0   :  { %11 = vsyncpa [#allocation4], 0  ;;  %s392_s0 = inlined_call_operand.hbm [shape: f32[8,10], index: 0, kind: input, shape index: {}]   ;;  %s393_s1 = inlined_call_operand.hbm [shape: f32[10,40], index: 1, kind: input, shape index: {}]   ;;  %s394_s2 = inlined_call_operand.vmem [shape: f32[1,40], index: 2, kind: input, shape index: {}]   ;;  %s395_s3 = inlined_call_operand.vmem [shape: f32[1,40], index: 3, kind: input, shape index: {}]   ;;  %s396_s4 = inlined_call_operand.<no memory space> [shape: f32[1,1], index: 4, kind: input, shape index: {}]   ;;  %s397_s5 = inlined_call_operand.hbm [shape: f32[1,8], index: 5, kind: output, shape index: {}]  }
   0x1   :  { %12 = vsyncpa [#allocation7], 0 }
   0x2   :  { %13 = vsyncpa [#allocation5], 0  ;;  %s301_s18 = smov [#allocation3]   ;;  %s302_s20 = smov [#allocation6]  }
   0x3   :  { %s20_s19 = sshll.u32 %s301_s18, 4  ;;  %s29_s21 = sshll.u32 %s302_s20, 4  ;;  %s21_s19 = int_to_ptr.vmem [resolvable:$true] %s20_s19  ;;  %s340_s21 = int_to_ptr.vmem [resolvable:$true] %s29_s21 }
   0x4   :  { %s229_s24 = scalar_lea.hbm %s392_s0, 128 }
   0x5   :  { %p230_p0 = scmp.ne.s32.totalorder %s392_s0, %s229_s24  ;;  %p233_p1 = scmp.lt.u32.totalorder %s229_s24, %s392_s0 }
   0x7   :  { %p235_p2 = pnand %p233_p1, %p230_p0 }
   0x9   :  { %238 = shalt.err (!%p235_p2)
}
   0xa   :  { %s239_s29 = scalar_lea.vmem %s21_s19, 128  ;;  %p244_p4 = scmp.lt.s32.totalorder %s21_s19, %s21_s19 }
   0xb   :  { %p240_p3 = scmp.ne.s32.totalorder %s21_s19, %s239_s29  ;;  %p245_p5 = scmp.lt.s32.totalorder %s239_s29, %s239_s29 }
   0xd   :  { %p246_p6 = por %p245_p5, %p244_p4 }
   0xf   :  { %p247_p7 = pnand %p246_p6, %p240_p3 }
  0x11   :  { %250 = shalt.err (!%p247_p7)
}
  0x12   :  { %23 = dma.hbm_to_vmem [thread:$0]  %s392_s0, 128, %s21_s19, [#allocation4]  }
  0x13   :  { %s251_s9 = scalar_lea.hbm %s393_s1, 256 }
  0x14   :  { %p252_p8 = scmp.ne.s32.totalorder %s393_s1, %s251_s9  ;;  %p255_p9 = scmp.lt.u32.totalorder %s251_s9, %s393_s1 }
  0x16   :  { %p257_p10 = pnand %p255_p9, %p252_p8 }
  0x18   :  { %260 = shalt.err (!%p257_p10)
}
  0x19   :  { %s261_s14 = scalar_lea.vmem %s340_s21, 256  ;;  %p266_p12 = scmp.lt.s32.totalorder %s340_s21, %s340_s21 }
  0x1a   :  { %p262_p11 = scmp.ne.s32.totalorder %s340_s21, %s261_s14  ;;  %p267_p13 = scmp.lt.s32.totalorder %s261_s14, %s261_s14 }
  0x1c   :  { %p268_p0 = por %p267_p13, %p266_p12 }
  0x1e   :  { %p269_p1 = pnand %p268_p0, %p262_p11 }
  0x20   :  { %272 = shalt.err (!%p269_p1)
}
  0x21   :  { %s303_s0 = smov 128   ;;  %s304_s15 = smov 8  }
  0x22   :  { %35 = dma.hbm_to_vmem [thread:$0]  %s393_s1, 256, %s340_s21, [#allocation7], %s303_s0, %s303_s0, %s304_s15  }
  0x23   :  { %295 = dma.done.wait [#allocation4], 128  }
  0x24   :  { %296 = vsyncadd [#allocation4], 4294967168 }
  0x25   :  { %297 = dma.done.wait [#allocation7], 256  }
  0x26   :  { %298 = vsyncadd [#allocation7], 4294967040  ;;  %v305_v0 = vmov 0.0|0.0   ;;  %vm306_vm0 = vmmov 0   ;;  %v307_v1 = vmov 0.0   ;;  %vm62_vm1 = vcmask 1041408  }
  0x27   :  { %216 = vmatprep.subr.bf16.mxu0 %v305_v0  ;;  %213 = vmatprep.mubr.msk.f32.mxu0 %vm306_vm0, %v307_v1  ;;  %v49_v2 = vld [vmem:[#allocation6] sm:$0xff]  ;;  %v50_v3 = vld [vmem:[#allocation6 + $0x8] sm:$0x3]  ;;  %vm308_vm2 = vmmov 1   ;;  %v48_v5 = vld [vmem:[#allocation3] sm:$0xff]  ;;  %vm58_vm4 = vcmask 80896   ;;  %v150_v14 = vstv %s396_s4 }
  0x28   :  { %vm218_vm3 = vmpackc.low %vm62_vm1, %vm308_vm2  ;;  %v217_v4 = vpack.c.bf16 %v50_v3, %v49_v2  ;;  %v202_v6 = vld [vmem:[%s394_s2] ss:$0 sm:$0xff]  ;;  %vm145_vm5 = vcmask 326656   ;;  %s309_s2 = smov [#allocation8]   ;;  %vm184_vm6 = vcmask 57344  }
  0x29   :  { %v205_v10 = vld [vmem:[%s395_s3] ss:$0 sm:$0xff]  ;;  %s192_s23 = sshll.u32 %s309_s2, 4  ;;  %s193_s23 = int_to_ptr.vmem [resolvable:$true] %s192_s23 }
  0x2a   :  { %219 = vmatpush3.bf16.msk.msra.mxu0 %vm218_vm3, %v217_v4  ;;  %s273_s24 = scalar_lea.vmem %s193_s23, 16  ;;  %s277_s3 = scalar_lea.vmem %s193_s23, 32 }
  0x2b   :  { %p274_p2 = scmp.ne.s32.totalorder %s193_s23, %s273_s24  ;;  %p278_p3 = scmp.lt.s32.totalorder %s193_s23, %s193_s23 }
  0x2c   :  { %p279_p4 = scmp.lt.s32.totalorder %s277_s3, %s273_s24 }
  0x2d   :  { %214 = vmatmul.mubr.msk.f32.vlgmr.msra.gmra.mrb[0].mxu0 %vm58_vm4, %v48_v5 }
  0x2e   :  { %p280_p5 = por %p279_p4, %p278_p3 }
  0x30   :  { %p281_p6 = pnand %p280_p5, %p274_p2 }
 0x100   :  { %v132_v7 = vpop.f32.mrb[0].mxu0 }
 0x101   :  { %v133_v8 = vadd.f32 %v202_v6, %v132_v7  ;;  %v215_v9 = vpop.f32.mrb[1].mxu0 }
 0x103   :  { %v136_v11 = vmax.f32 %v133_v8, 0.0 }
 0x105   :  { %v144_v12 = vmul.f32 %v205_v10, %v136_v11 }
 0x107   :  { %v146_v13 = vsel %vm145_vm5, %v144_v12, 0.0 }
 0x108   :  { %147 = vadd.xlane.f32.xlu0 %v146_v13 }
 0x195   :  { %v148_v15 = vpop.xlane.xlu0 %147 }
 0x196   :  { %v151_v16 = vadd.f32 %v150_v14, %v148_v15 }
 0x198   :  { %152 = vxpose.xlu0.b32.start.end [1/1] (short) (narrow) %v151_v16, 8 }
 0x218   :  { %v168_v17 = vpop.trf.xlu0 }
 0x219   :  { %185 = vst.msk [vmem:[#allocation8] sm:$0x1] %vm184_vm6, %v168_v17 }
 0x21a   :  { %284 = shalt.err (!%p281_p6)
}
 0x21b   :  { %s285_s4 = scalar_lea.hbm %s397_s5, 16 }
 0x21c   :  { %p286_p7 = scmp.ne.s32.totalorder %s397_s5, %s285_s4  ;;  %p289_p8 = scmp.lt.u32.totalorder %s285_s4, %s397_s5 }
 0x21e   :  { %p291_p9 = pnand %p289_p8, %p286_p7 }
 0x220   :  { %294 = shalt.err (!%p291_p9)
}
 0x221   :  { %195 = dma.vmem_to_hbm [thread:$0]  %s193_s23, 16, %s397_s5, [#allocation5]  }
 0x222   :  { %299 = dma.done.wait [#allocation5], 16  }
 0x223   :  { %300 = vsyncadd [#allocation5], 4294967280 }
 0x224   :  { %199 = vsyncpa [#allocation4], 1 }
 0x225   :  { %200 = vsyncpa [#allocation7], 1 }
 0x226   :  { %201 = vsyncpa [#allocation5], 1 }

</bundles_post_ra>
